<compile_context>
chip_gen: v7x
topology: tpu7x:2x2x1
jax: 0.10.0
libtpu: 0.0.40
codegen_flags: <defaults>
</compile_context>

<pallas_src>
import functools

import jax
import jax.numpy as jnp
import numpy as np
from jax import lax
from jax.experimental import pallas as pl
from jax.experimental.pallas import tpu as pltpu


def _deconv_relu_kernel(x_ref, w_ref, o_ref, stage_ref, *, ks, We, TD, De, Lp, Cin_p):
    """One batch element x one tile of TD output D-planes.

    x_ref:     (De, Cin_p, HWe_p)      whole padded/dilated input slab (resident per n)
    w_ref:     (Cout_p, ks^3 * Cin_p)  folded, flipped weight (resident for whole call)
    o_ref:     (TD, Cout_p, Lp)        lane-dense output D-plane tile
    stage_ref: (ks^3 * Cin_p, Lp)      im2col staging buffer (VMEM scratch)
    """
    d_base = pl.program_id(1) * TD
    w = w_ref[...]

    def body(d, carry):
        # Build the im2col column block for output plane `d_base + d`: each of the
        # ks^3 taps is a contiguous lane window of one input D-plane.
        for kd in range(ks):
            row = jnp.minimum(d_base + d + kd, De - 1)     # clamp: padded D tiles only
            plane = x_ref[row]                             # (Cin_p, HWe_p)
            for kh in range(ks):
                for kw in range(ks):
                    t = (kd * ks + kh) * ks + kw
                    off = kh * We + kw                     # static lane offset
                    stage_ref[t * Cin_p:(t + 1) * Cin_p, :] = plane[:, off:off + Lp]
        # One MXU contraction with K = ks^3 * Cin_p, then fused ReLU.
        acc = jnp.dot(w, stage_ref[...], preferred_element_type=jnp.float32)
        o_ref[d] = jnp.maximum(acc, 0.0).astype(o_ref.dtype)
        return carry

    lax.fori_loop(0, TD, body, 0)


def basic_deconvolution_block(x, weight, ks=3, stride=1, compute_dtype=None):
    """Dense equivalent of spnn.Conv3d(inc, outc, ks, stride, transposed=True) -> ReLU.

    x:      (N, Cin, D, H, W)        NCDHW
    weight: (Cin, Cout, ks, ks, ks)  ConvTranspose3d weight layout, no bias
    returns (N, Cout, Do, Ho, Wo),   Do = (D-1)*stride + ks (padding 0).
    """
    N, Cin, D, H, W = x.shape
    Cout = weight.shape[1]
    Do, Ho, Wo = ((s - 1) * stride + ks for s in (D, H, W))

    cdtype = jnp.dtype(compute_dtype) if compute_dtype is not None else jnp.dtype(x.dtype)
    cmult = 16 if cdtype.itemsize < 4 else 8              # bf16 packs 16 rows / sublane group
    Cin_p = -(-Cin // cmult) * cmult
    Cout_p = -(-Cout // cmult) * cmult

    # ------------- wrapper glue (plain XLA): layout, dilation, halo padding ----------
    x_p = jnp.pad(x, ((0, 0), (0, Cin_p - Cin), (0, 0), (0, 0), (0, 0)))
    if stride > 1:
        Dd, Hd, Wd = ((s - 1) * stride + 1 for s in (D, H, W))
        x_d = jnp.zeros((N, Cin_p, Dd, Hd, Wd), x_p.dtype)
        x_d = x_d.at[:, :, ::stride, ::stride, ::stride].set(x_p)
    else:
        x_d = x_p
    p = ks - 1
    x_e = jnp.pad(x_d, ((0, 0), (0, 0), (p, p), (p, p), (p, p)))
    De, He, We = x_e.shape[2:]

    # flat-window trick: output plane lanes l = ho*We + wo, L contiguous positions; the
    # (kh, kw) tap is then the contiguous lane window [kh*We + kw, kh*We + kw + L).
    L = (Ho - 1) * We + Wo
    Lp = -(-L // 128) * 128                                    # 128-aligned output lanes
    HWe_p = -(-((ks - 1) * (We + 1) + Lp) // 128) * 128        # every Lp-wide tap window in bounds

    x_flat = jnp.transpose(x_e, (0, 2, 1, 3, 4)).reshape(N, De, Cin_p, He * We)
    x_flat = jnp.pad(x_flat, ((0, 0), (0, 0), (0, 0), (0, HWe_p - He * We)))
    x_flat = x_flat.astype(cdtype)

    # transposed conv == correlation with the flipped kernel; fold (kd,kh,kw,ci) into K.
    w_p = jnp.pad(weight, ((0, Cin_p - Cin), (0, Cout_p - Cout), (0, 0), (0, 0), (0, 0)))
    w_t = jnp.transpose(w_p, (2, 3, 4, 1, 0))[::-1, ::-1, ::-1]        # (kd,kh,kw,co,ci), flipped
    w_all = jnp.transpose(w_t, (3, 0, 1, 2, 4)).reshape(Cout_p, ks ** 3 * Cin_p).astype(cdtype)

    # D-tiling: slab is resident per n; keep >= 2 grid points for v7x megacore when N == 1.
    nDt = 1 if N >= 2 else 2
    TD = -(-Do // nDt)
    nDt = -(-Do // TD)
    Do_p = nDt * TD

    out_itemsize = jnp.dtype(x.dtype).itemsize
    in_blk = De * Cin_p * HWe_p * cdtype.itemsize
    w_bytes = w_all.size * cdtype.itemsize
    out_blk = TD * Cout_p * Lp * out_itemsize
    stage_bytes = ks ** 3 * Cin_p * Lp * cdtype.itemsize
    vmem_limit = min(128 * 1024 * 1024,
                     max(16 * 1024 * 1024,
                         int(1.3 * (2 * in_blk + 2 * w_bytes + 2 * out_blk + stage_bytes))
                         + (4 << 20)))

    kernel = functools.partial(_deconv_relu_kernel, ks=ks, We=We, TD=TD, De=De,
                               Lp=Lp, Cin_p=Cin_p)

    out_flat = pl.pallas_call(
        kernel,
        out_shape=jax.ShapeDtypeStruct((N, Do_p, Cout_p, Lp), x.dtype),
        grid_spec=pltpu.PrefetchScalarGridSpec(
            num_scalar_prefetch=0,
            grid=(N, nDt),
            in_specs=[
                # whole padded input D-slab; constant block index per n -> DMA'd once per n
                pl.BlockSpec((pl.Squeezed(), De, Cin_p, HWe_p),
                             lambda n, t: (n, 0, 0, 0)),
                # folded weight; constant block index -> resident for the whole call
                pl.BlockSpec((Cout_p, ks ** 3 * Cin_p), lambda n, t: (0, 0)),
            ],
            out_specs=pl.BlockSpec((pl.Squeezed(), TD, Cout_p, Lp),
                                   lambda n, t: (n, t, 0, 0)),
            scratch_shapes=[pltpu.VMEM((ks ** 3 * Cin_p, Lp), cdtype)],
        ),
        compiler_params=pltpu.CompilerParams(
            dimension_semantics=("parallel", "parallel"),
            vmem_limit_bytes=vmem_limit),
        cost_estimate=pl.CostEstimate(
            flops=2 * N * Do * L * Cout_p * Cin_p * ks ** 3,
            transcendentals=0,
            bytes_accessed=int(x_flat.size * x_flat.dtype.itemsize
                               + w_all.size * w_all.dtype.itemsize
                               + N * Do_p * Cout_p * Lp * out_itemsize)),
    )(x_flat, w_all)

    # ------------- un-flatten: drop channel / D / lane padding ------------------------
    out = out_flat[:, :Do, :Cout, :L]
    out = jnp.pad(out, ((0, 0), (0, 0), (0, 0), (0, Ho * We - L)))
    out = out.reshape(N, Do, Cout, Ho, We)[..., :Wo]
    return jnp.transpose(out, (0, 2, 1, 3, 4))                 # back to NCDHW


def _reference(x, weight, ks, stride):
    """Pure-JAX dense ConvTranspose3d (no bias) + ReLU reference."""
    w_eff = jnp.transpose(weight, (2, 3, 4, 0, 1))[::-1, ::-1, ::-1]  # DHWIO, flipped
    p = ks - 1
    out = lax.conv_general_dilated(
        x, w_eff,
        window_strides=(1, 1, 1),
        padding=[(p, p)] * 3,
        lhs_dilation=(stride,) * 3,
        dimension_numbers=('NCDHW', 'DHWIO', 'NCDHW'),
        precision=lax.Precision.HIGHEST)
    return jnp.maximum(out, 0.0)


if __name__ == "__main__":
    # Module config: BasicDeconvolutionBlock(inc=4, outc=8, ks=3, stride=1)
    inc, outc, ks, stride = 4, 8, 3, 1
    N, D, H, W = 2, 8, 8, 8

    key = jax.random.PRNGKey(0)
    kx, kw, kx2 = jax.random.split(key, 3)
    x = jax.random.normal(kx, (N, inc, D, H, W), dtype=jnp.float32)
    fan = inc * ks ** 3
    weight = jax.random.normal(kw, (inc, outc, ks, ks, ks), dtype=jnp.float32) / jnp.sqrt(fan)

    out = jax.block_until_ready(basic_deconvolution_block(x, weight, ks=ks, stride=stride))
    ref = jax.block_until_ready(_reference(x, weight, ks, stride))
    assert out.shape == ref.shape == (N, outc, (D - 1) * stride + ks,
                                      (H - 1) * stride + ks, (W - 1) * stride + ks)
    np.testing.assert_allclose(np.asarray(out), np.asarray(ref), rtol=1e-4, atol=1e-4)

    # stride=2 path (wrapper-side dilation; also exercises N=1 -> 2 D-tiles + row clamp)
    x2 = jax.random.normal(kx2, (1, inc, 5, 5, 5), dtype=jnp.float32)
    out2 = jax.block_until_ready(basic_deconvolution_block(x2, weight, ks=ks, stride=2))
    ref2 = jax.block_until_ready(_reference(x2, weight, ks, 2))
    np.testing.assert_allclose(np.asarray(out2), np.asarray(ref2), rtol=1e-4, atol=1e-4)

    # bf16 compute path (halved HBM read bytes on v6e/v7x); looser tolerance expected.
    out_bf16 = jax.block_until_ready(
        basic_deconvolution_block(x, weight, ks=ks, stride=stride,
                                  compute_dtype=jnp.bfloat16))
    np.testing.assert_allclose(np.asarray(out_bf16), np.asarray(ref), rtol=5e-2, atol=5e-2)

    print("KERNEL_OK")
</pallas_src>

<mosaic_0001>
module attributes {stable_mosaic.version = 11 : i64} {
  func.func @_deconv_relu_kernel(%arg0: i32, %arg1: i32, %arg2: memref<1x12x8x256xf32, #tpu.memory_space<vmem>>, %arg3: memref<8x216xf32, #tpu.memory_space<vmem>>, %arg4: memref<1x10x8x128xf32, #tpu.memory_space<vmem>>, %arg5: memref<216x128xf32, #tpu.memory_space<vmem>>) attributes {dimension_semantics = [#tpu.dimension_semantics<parallel>, #tpu.dimension_semantics<parallel>], iteration_bounds = array<i64: 2, 1>, scalar_prefetch = 0 : i64, scratch_operands = 1 : i64, tpu.core_type = #tpu.core_type<tc>, window_params = [{transform_indices = @transform_0, window_bounds = array<i64: 1, 12, 8, 256>}, {pipeline_mode = #tpu.pipeline_mode<synchronous>, transform_indices = @transform_1, window_bounds = array<i64: 8, 216>}, {transform_indices = @transform_2, window_bounds = array<i64: 1, 10, 8, 128>}]} {
    %c10_i32 = arith.constant 10 : i32
    %0 = arith.muli %arg1, %c10_i32 : i32
    %c0 = arith.constant 0 : index
    %c0_0 = arith.constant 0 : index
    %1 = vector.load %arg3[%c0, %c0_0] : memref<8x216xf32, #tpu.memory_space<vmem>>, vector<8x216xf32>
    %c0_i32 = arith.constant 0 : i32
    %c10_i32_1 = arith.constant 10 : i32
    %2 = arith.addi %c0_i32, %c10_i32_1 : i32
    %c1_i32 = arith.constant 1 : i32
    scf.for %arg6 = %c0_i32 to %2 step %c1_i32  : i32 {
      %3 = arith.addi %0, %arg6 : i32
      %c0_i32_3 = arith.constant 0 : i32
      %4 = arith.addi %3, %c0_i32_3 : i32
      %c11_i32 = arith.constant 11 : i32
      %5 = arith.minsi %4, %c11_i32 : i32
      %c0_4 = arith.constant 0 : index
      %6 = arith.index_cast %5 : i32 to index
      %c0_5 = arith.constant 0 : index
      %c0_6 = arith.constant 0 : index
      %7 = vector.load %arg2[%c0_4, %6, %c0_5, %c0_6] : memref<1x12x8x256xf32, #tpu.memory_space<vmem>>, vector<1x1x8x256xf32>
      %8 = vector.shape_cast %7 : vector<1x1x8x256xf32> to vector<8x256xf32>
      %9 = vector.extract_strided_slice %8 {offsets = [0, 0], sizes = [8, 128], strides = [1, 1]} : vector<8x256xf32> to vector<8x128xf32>
      %c0_7 = arith.constant 0 : index
      %c0_8 = arith.constant 0 : index
      %10 = vector.load %arg5[%c0_7, %c0_8] : memref<216x128xf32, #tpu.memory_space<vmem>>, vector<8x128xf32>
      tpu.vector_store %arg5[%c0_7, %c0_8], %9 {strides = array<i32>} : memref<216x128xf32, #tpu.memory_space<vmem>>, vector<8x128xf32>,
      %11 = vector.extract_strided_slice %8 {offsets = [0, 1], sizes = [8, 128], strides = [1, 1]} : vector<8x256xf32> to vector<8x128xf32>
      %c8 = arith.constant 8 : index
      %c0_9 = arith.constant 0 : index
      %12 = vector.load %arg5[%c8, %c0_9] : memref<216x128xf32, #tpu.memory_space<vmem>>, vector<8x128xf32>
      tpu.vector_store %arg5[%c8, %c0_9], %11 {strides = array<i32>} : memref<216x128xf32, #tpu.memory_space<vmem>>, vector<8x128xf32>,
      %13 = vector.extract_strided_slice %8 {offsets = [0, 2], sizes = [8, 128], strides = [1, 1]} : vector<8x256xf32> to vector<8x128xf32>
      %c16 = arith.constant 16 : index
      %c0_10 = arith.constant 0 : index
      %14 = vector.load %arg5[%c16, %c0_10] : memref<216x128xf32, #tpu.memory_space<vmem>>, vector<8x128xf32>
      tpu.vector_store %arg5[%c16, %c0_10], %13 {strides = array<i32>} : memref<216x128xf32, #tpu.memory_space<vmem>>, vector<8x128xf32>,
      %15 = vector.extract_strided_slice %8 {offsets = [0, 12], sizes = [8, 128], strides = [1, 1]} : vector<8x256xf32> to vector<8x128xf32>
      %c24 = arith.constant 24 : index
      %c0_11 = arith.constant 0 : index
      %16 = vector.load %arg5[%c24, %c0_11] : memref<216x128xf32, #tpu.memory_space<vmem>>, vector<8x128xf32>
      tpu.vector_store %arg5[%c24, %c0_11], %15 {strides = array<i32>} : memref<216x128xf32, #tpu.memory_space<vmem>>, vector<8x128xf32>,
      %17 = vector.extract_strided_slice %8 {offsets = [0, 13], sizes = [8, 128], strides = [1, 1]} : vector<8x256xf32> to vector<8x128xf32>
      %c32 = arith.constant 32 : index
      %c0_12 = arith.constant 0 : index
      %18 = vector.load %arg5[%c32, %c0_12] : memref<216x128xf32, #tpu.memory_space<vmem>>, vector<8x128xf32>
      tpu.vector_store %arg5[%c32, %c0_12], %17 {strides = array<i32>} : memref<216x128xf32, #tpu.memory_space<vmem>>, vector<8x128xf32>,
      %19 = vector.extract_strided_slice %8 {offsets = [0, 14], sizes = [8, 128], strides = [1, 1]} : vector<8x256xf32> to vector<8x128xf32>
      %c40 = arith.constant 40 : index
      %c0_13 = arith.constant 0 : index
      %20 = vector.load %arg5[%c40, %c0_13] : memref<216x128xf32, #tpu.memory_space<vmem>>, vector<8x128xf32>
      tpu.vector_store %arg5[%c40, %c0_13], %19 {strides = array<i32>} : memref<216x128xf32, #tpu.memory_space<vmem>>, vector<8x128xf32>,
      %21 = vector.extract_strided_slice %8 {offsets = [0, 24], sizes = [8, 128], strides = [1, 1]} : vector<8x256xf32> to vector<8x128xf32>
      %c48 = arith.constant 48 : index
      %c0_14 = arith.constant 0 : index
      %22 = vector.load %arg5[%c48, %c0_14] : memref<216x128xf32, #tpu.memory_space<vmem>>, vector<8x128xf32>
      tpu.vector_store %arg5[%c48, %c0_14], %21 {strides = array<i32>} : memref<216x128xf32, #tpu.memory_space<vmem>>, vector<8x128xf32>,
      %23 = vector.extract_strided_slice %8 {offsets = [0, 25], sizes = [8, 128], strides = [1, 1]} : vector<8x256xf32> to vector<8x128xf32>
      %c56 = arith.constant 56 : index
      %c0_15 = arith.constant 0 : index
      %24 = vector.load %arg5[%c56, %c0_15] : memref<216x128xf32, #tpu.memory_space<vmem>>, vector<8x128xf32>
      tpu.vector_store %arg5[%c56, %c0_15], %23 {strides = array<i32>} : memref<216x128xf32, #tpu.memory_space<vmem>>, vector<8x128xf32>,
      %25 = vector.extract_strided_slice %8 {offsets = [0, 26], sizes = [8, 128], strides = [1, 1]} : vector<8x256xf32> to vector<8x128xf32>
      %c64 = arith.constant 64 : index
      %c0_16 = arith.constant 0 : index
      %26 = vector.load %arg5[%c64, %c0_16] : memref<216x128xf32, #tpu.memory_space<vmem>>, vector<8x128xf32>
      tpu.vector_store %arg5[%c64, %c0_16], %25 {strides = array<i32>} : memref<216x128xf32, #tpu.memory_space<vmem>>, vector<8x128xf32>,
      %27 = arith.addi %0, %arg6 : i32
      %c1_i32_17 = arith.constant 1 : i32
      %28 = arith.addi %27, %c1_i32_17 : i32
      %c11_i32_18 = arith.constant 11 : i32
      %29 = arith.minsi %28, %c11_i32_18 : i32
      %c0_19 = arith.constant 0 : index
      %30 = arith.index_cast %29 : i32 to index
      %c0_20 = arith.constant 0 : index
      %c0_21 = arith.constant 0 : index
      %31 = vector.load %arg2[%c0_19, %30, %c0_20, %c0_21] : memref<1x12x8x256xf32, #tpu.memory_space<vmem>>, vector<1x1x8x256xf32>
      %32 = vector.shape_cast %31 : vector<1x1x8x256xf32> to vector<8x256xf32>
      %33 = vector.extract_strided_slice %32 {offsets = [0, 0], sizes = [8, 128], strides = [1, 1]} : vector<8x256xf32> to vector<8x128xf32>
      %c72 = arith.constant 72 : index
      %c0_22 = arith.constant 0 : index
      %34 = vector.load %arg5[%c72, %c0_22] : memref<216x128xf32, #tpu.memory_space<vmem>>, vector<8x128xf32>
      tpu.vector_store %arg5[%c72, %c0_22], %33 {strides = array<i32>} : memref<216x128xf32, #tpu.memory_space<vmem>>, vector<8x128xf32>,
      %35 = vector.extract_strided_slice %32 {offsets = [0, 1], sizes = [8, 128], strides = [1, 1]} : vector<8x256xf32> to vector<8x128xf32>
      %c80 = arith.constant 80 : index
      %c0_23 = arith.constant 0 : index
      %36 = vector.load %arg5[%c80, %c0_23] : memref<216x128xf32, #tpu.memory_space<vmem>>, vector<8x128xf32>
      tpu.vector_store %arg5[%c80, %c0_23], %35 {strides = array<i32>} : memref<216x128xf32, #tpu.memory_space<vmem>>, vector<8x128xf32>,
      %37 = vector.extract_strided_slice %32 {offsets = [0, 2], sizes = [8, 128], strides = [1, 1]} : vector<8x256xf32> to vector<8x128xf32>
      %c88 = arith.constant 88 : index
      %c0_24 = arith.constant 0 : index
      %38 = vector.load %arg5[%c88, %c0_24] : memref<216x128xf32, #tpu.memory_space<vmem>>, vector<8x128xf32>
      tpu.vector_store %arg5[%c88, %c0_24], %37 {strides = array<i32>} : memref<216x128xf32, #tpu.memory_space<vmem>>, vector<8x128xf32>,
      %39 = vector.extract_strided_slice %32 {offsets = [0, 12], sizes = [8, 128], strides = [1, 1]} : vector<8x256xf32> to vector<8x128xf32>
      %c96 = arith.constant 96 : index
      %c0_25 = arith.constant 0 : index
      %40 = vector.load %arg5[%c96, %c0_25] : memref<216x128xf32, #tpu.memory_space<vmem>>, vector<8x128xf32>
      tpu.vector_store %arg5[%c96, %c0_25], %39 {strides = array<i32>} : memref<216x128xf32, #tpu.memory_space<vmem>>, vector<8x128xf32>,
      %41 = vector.extract_strided_slice %32 {offsets = [0, 13], sizes = [8, 128], strides = [1, 1]} : vector<8x256xf32> to vector<8x128xf32>
      %c104 = arith.constant 104 : index
      %c0_26 = arith.constant 0 : index
      %42 = vector.load %arg5[%c104, %c0_26] : memref<216x128xf32, #tpu.memory_space<vmem>>, vector<8x128xf32>
      tpu.vector_store %arg5[%c104, %c0_26], %41 {strides = array<i32>} : memref<216x128xf32, #tpu.memory_space<vmem>>, vector<8x128xf32>,
      %43 = vector.extract_strided_slice %32 {offsets = [0, 14], sizes = [8, 128], strides = [1, 1]} : vector<8x256xf32> to vector<8x128xf32>
      %c112 = arith.constant 112 : index
      %c0_27 = arith.constant 0 : index
      %44 = vector.load %arg5[%c112, %c0_27] : memref<216x128xf32, #tpu.memory_space<vmem>>, vector<8x128xf32>
      tpu.vector_store %arg5[%c112, %c0_27], %43 {strides = array<i32>} : memref<216x128xf32, #tpu.memory_space<vmem>>, vector<8x128xf32>,
      %45 = vector.extract_strided_slice %32 {offsets = [0, 24], sizes = [8, 128], strides = [1, 1]} : vector<8x256xf32> to vector<8x128xf32>
      %c120 = arith.constant 120 : index
      %c0_28 = arith.constant 0 : index
      %46 = vector.load %arg5[%c120, %c0_28] : memref<216x128xf32, #tpu.memory_space<vmem>>, vector<8x128xf32>
      tpu.vector_store %arg5[%c120, %c0_28], %45 {strides = array<i32>} : memref<216x128xf32, #tpu.memory_space<vmem>>, vector<8x128xf32>,
      %47 = vector.extract_strided_slice %32 {offsets = [0, 25], sizes = [8, 128], strides = [1, 1]} : vector<8x256xf32> to vector<8x128xf32>
      %c128 = arith.constant 128 : index
      %c0_29 = arith.constant 0 : index
      %48 = vector.load %arg5[%c128, %c0_29] : memref<216x128xf32, #tpu.memory_space<vmem>>, vector<8x128xf32>
      tpu.vector_store %arg5[%c128, %c0_29], %47 {strides = array<i32>} : memref<216x128xf32, #tpu.memory_space<vmem>>, vector<8x128xf32>,
      %49 = vector.extract_strided_slice %32 {offsets = [0, 26], sizes = [8, 128], strides = [1, 1]} : vector<8x256xf32> to vector<8x128xf32>
      %c136 = arith.constant 136 : index
      %c0_30 = arith.constant 0 : index
      %50 = vector.load %arg5[%c136, %c0_30] : memref<216x128xf32, #tpu.memory_space<vmem>>, vector<8x128xf32>
      tpu.vector_store %arg5[%c136, %c0_30], %49 {strides = array<i32>} : memref<216x128xf32, #tpu.memory_space<vmem>>, vector<8x128xf32>,
      %51 = arith.addi %0, %arg6 : i32
      %c2_i32 = arith.constant 2 : i32
      %52 = arith.addi %51, %c2_i32 : i32
      %c11_i32_31 = arith.constant 11 : i32
      %53 = arith.minsi %52, %c11_i32_31 : i32
      %c0_32 = arith.constant 0 : index
      %54 = arith.index_cast %53 : i32 to index
      %c0_33 = arith.constant 0 : index
      %c0_34 = arith.constant 0 : index
      %55 = vector.load %arg2[%c0_32, %54, %c0_33, %c0_34] : memref<1x12x8x256xf32, #tpu.memory_space<vmem>>, vector<1x1x8x256xf32>
      %56 = vector.shape_cast %55 : vector<1x1x8x256xf32> to vector<8x256xf32>
      %57 = vector.extract_strided_slice %56 {offsets = [0, 0], sizes = [8, 128], strides = [1, 1]} : vector<8x256xf32> to vector<8x128xf32>
      %c144 = arith.constant 144 : index
      %c0_35 = arith.constant 0 : index
      %58 = vector.load %arg5[%c144, %c0_35] : memref<216x128xf32, #tpu.memory_space<vmem>>, vector<8x128xf32>
      tpu.vector_store %arg5[%c144, %c0_35], %57 {strides = array<i32>} : memref<216x128xf32, #tpu.memory_space<vmem>>, vector<8x128xf32>,
      %59 = vector.extract_strided_slice %56 {offsets = [0, 1], sizes = [8, 128], strides = [1, 1]} : vector<8x256xf32> to vector<8x128xf32>
      %c152 = arith.constant 152 : index
      %c0_36 = arith.constant 0 : index
      %60 = vector.load %arg5[%c152, %c0_36] : memref<216x128xf32, #tpu.memory_space<vmem>>, vector<8x128xf32>
      tpu.vector_store %arg5[%c152, %c0_36], %59 {strides = array<i32>} : memref<216x128xf32, #tpu.memory_space<vmem>>, vector<8x128xf32>,
      %61 = vector.extract_strided_slice %56 {offsets = [0, 2], sizes = [8, 128], strides = [1, 1]} : vector<8x256xf32> to vector<8x128xf32>
      %c160 = arith.constant 160 : index
      %c0_37 = arith.constant 0 : index
      %62 = vector.load %arg5[%c160, %c0_37] : memref<216x128xf32, #tpu.memory_space<vmem>>, vector<8x128xf32>
      tpu.vector_store %arg5[%c160, %c0_37], %61 {strides = array<i32>} : memref<216x128xf32, #tpu.memory_space<vmem>>, vector<8x128xf32>,
      %63 = vector.extract_strided_slice %56 {offsets = [0, 12], sizes = [8, 128], strides = [1, 1]} : vector<8x256xf32> to vector<8x128xf32>
      %c168 = arith.constant 168 : index
      %c0_38 = arith.constant 0 : index
      %64 = vector.load %arg5[%c168, %c0_38] : memref<216x128xf32, #tpu.memory_space<vmem>>, vector<8x128xf32>
      tpu.vector_store %arg5[%c168, %c0_38], %63 {strides = array<i32>} : memref<216x128xf32, #tpu.memory_space<vmem>>, vector<8x128xf32>,
      %65 = vector.extract_strided_slice %56 {offsets = [0, 13], sizes = [8, 128], strides = [1, 1]} : vector<8x256xf32> to vector<8x128xf32>
      %c176 = arith.constant 176 : index
      %c0_39 = arith.constant 0 : index
      %66 = vector.load %arg5[%c176, %c0_39] : memref<216x128xf32, #tpu.memory_space<vmem>>, vector<8x128xf32>
      tpu.vector_store %arg5[%c176, %c0_39], %65 {strides = array<i32>} : memref<216x128xf32, #tpu.memory_space<vmem>>, vector<8x128xf32>,
      %67 = vector.extract_strided_slice %56 {offsets = [0, 14], sizes = [8, 128], strides = [1, 1]} : vector<8x256xf32> to vector<8x128xf32>
      %c184 = arith.constant 184 : index
      %c0_40 = arith.constant 0 : index
      %68 = vector.load %arg5[%c184, %c0_40] : memref<216x128xf32, #tpu.memory_space<vmem>>, vector<8x128xf32>
      tpu.vector_store %arg5[%c184, %c0_40], %67 {strides = array<i32>} : memref<216x128xf32, #tpu.memory_space<vmem>>, vector<8x128xf32>,
      %69 = vector.extract_strided_slice %56 {offsets = [0, 24], sizes = [8, 128], strides = [1, 1]} : vector<8x256xf32> to vector<8x128xf32>
      %c192 = arith.constant 192 : index
      %c0_41 = arith.constant 0 : index
      %70 = vector.load %arg5[%c192, %c0_41] : memref<216x128xf32, #tpu.memory_space<vmem>>, vector<8x128xf32>
      tpu.vector_store %arg5[%c192, %c0_41], %69 {strides = array<i32>} : memref<216x128xf32, #tpu.memory_space<vmem>>, vector<8x128xf32>,
      %71 = vector.extract_strided_slice %56 {offsets = [0, 25], sizes = [8, 128], strides = [1, 1]} : vector<8x256xf32> to vector<8x128xf32>
      %c200 = arith.constant 200 : index
      %c0_42 = arith.constant 0 : index
      %72 = vector.load %arg5[%c200, %c0_42] : memref<216x128xf32, #tpu.memory_space<vmem>>, vector<8x128xf32>
      tpu.vector_store %arg5[%c200, %c0_42], %71 {strides = array<i32>} : memref<216x128xf32, #tpu.memory_space<vmem>>, vector<8x128xf32>,
      %73 = vector.extract_strided_slice %56 {offsets = [0, 26], sizes = [8, 128], strides = [1, 1]} : vector<8x256xf32> to vector<8x128xf32>
      %c208 = arith.constant 208 : index
      %c0_43 = arith.constant 0 : index
      %74 = vector.load %arg5[%c208, %c0_43] : memref<216x128xf32, #tpu.memory_space<vmem>>, vector<8x128xf32>
      tpu.vector_store %arg5[%c208, %c0_43], %73 {strides = array<i32>} : memref<216x128xf32, #tpu.memory_space<vmem>>, vector<8x128xf32>,
      %c0_44 = arith.constant 0 : index
      %c0_45 = arith.constant 0 : index
      %75 = vector.load %arg5[%c0_44, %c0_45] : memref<216x128xf32, #tpu.memory_space<vmem>>, vector<216x128xf32>
      %cst = arith.constant dense<0.000000e+00> : vector<8x128xf32>
      %76 = tpu.matmul %1, %75, %cst {dimension_numbers = #tpu.dot_dimension_numbers<[1], [0], [0], [1], [0, 0, 1, 1], [], []>} : vector<8x216xf32>, vector<216x128xf32>, vector<8x128xf32> -> vector<8x128xf32>
      %cst_46 = arith.constant 0.000000e+00 : f32
      %77 = vector.broadcast %cst_46 : f32 to vector<8x128xf32>
      %78 = arith.maximumf %76, %77 : vector<8x128xf32>
      %c0_47 = arith.constant 0 : index
      %79 = arith.index_cast %arg6 : i32 to index
      %c0_48 = arith.constant 0 : index
      %c0_49 = arith.constant 0 : index
      %80 = vector.load %arg4[%c0_47, %79, %c0_48, %c0_49] : memref<1x10x8x128xf32, #tpu.memory_space<vmem>>, vector<1x1x8x128xf32>
      %81 = vector.shape_cast %80 : vector<1x1x8x128xf32> to vector<8x128xf32>
      %82 = vector.shape_cast %78 : vector<8x128xf32> to vector<1x1x8x128xf32>
      tpu.vector_store %arg4[%c0_47, %79, %c0_48, %c0_49], %82 {strides = array<i32>} : memref<1x10x8x128xf32, #tpu.memory_space<vmem>>, vector<1x1x8x128xf32>,
    }
    %c10_i32_2 = arith.constant 10 : i32
    return
  }
  func.func @transform_0(%arg0: i32, %arg1: i32) -> (i32, i32, i32, i32) {
    %c0_i32 = arith.constant 0 : i32
    %c0_i32_0 = arith.constant 0 : i32
    %c0_i32_1 = arith.constant 0 : i32
    %c0_i32_2 = arith.constant 0 : i32
    return %arg0, %c0_i32, %c0_i32_0, %c0_i32_1 : i32, i32, i32, i32
  }
  func.func @transform_1(%arg0: i32, %arg1: i32) -> (i32, i32) {
    %c0_i32 = arith.constant 0 : i32
    %c0_i32_0 = arith.constant 0 : i32
    %c0_i32_1 = arith.constant 0 : i32
    return %c0_i32, %c0_i32_0 : i32, i32
  }
  func.func @transform_2(%arg0: i32, %arg1: i32) -> (i32, i32, i32, i32) {
    %c0_i32 = arith.constant 0 : i32
    %c0_i32_0 = arith.constant 0 : i32
    %c0_i32_1 = arith.constant 0 : i32
    return %arg0, %arg1, %c0_i32, %c0_i32_0 : i32, i32, i32, i32
  }
}

</mosaic_0001>

<bundles_post_ra>
// kernel: tpu_custom_call.1
= control target key start
LH: loop header
LB: loop body
LE: loop exit
PB: predicated region body
PF: predicated region fallthrough
CT: control target
= control target key end

     0   :  { %7 = vsyncpa [#allocation4], 0  ;;  %s1421_s0 = inlined_call_operand.hbm [shape: f32[2,12,8,256], index: 0, kind: input, shape index: {}]   ;;  %s1422_s1 = inlined_call_operand.hbm [shape: f32[8,216], index: 1, kind: input, shape index: {}]   ;;  %s1423_s2 = inlined_call_operand.hbm [shape: f32[2,10,8,128], index: 2, kind: output, shape index: {}]  }
   0x1   :  { %9 = vsyncpa [#allocation4 + $0x1], 0 }
   0x2   :  { %10 = vsyncpa [#allocation7], 0 }
   0x3   :  { %11 = vsyncpa [#allocation5], 0 }
   0x4   :  { %13 = vsyncpa [#allocation5 + $0x1], 0  ;;  %s1098_s9 = smov 0   ;;  %s1100_s10 = smov 0  }
   0x5   :  { %s1102_s11 = smov 0   ;;  %s1104_s12 = smov 0  }
   0x6   :  { %s1106_s13 = smov 0   ;;  %s1108_s14 = smov 0  }
   0x7 LB: > { %s636_s15 = sadd.s32 4294967295, %s1060_s14   ;;  %s637_s16 = sadd.s32 4294967294, %s1060_s14   ;;  %s1060_s14 = sphi %s1108_s14, %s19_s14   ;;  %s1056_s13 = sphi %s1106_s13, %s1452_s13   ;;  %s1052_s12 = sphi %s1104_s12, %s1451_s12   ;;  %s1048_s11 = sphi %s1102_s11, %s1450_s11   ;;  %s1044_s10 = sphi %s1100_s10, %s1449_s10   ;;  %s1040_s9 = sphi %s1098_s9, %s1448_s9  }
   0x8   : > { %s38_s17 = sadd.s32 1, %s1048_s11  ;;  %p45_p0 = scmp.ne.s32.totalorder %s1048_s11, %s1044_s10 }
   0x9   : > { %p46_p1 = scmp.eq.s32.totalorder %s1060_s14, 0  ;;  %p51_p2 = scmp.ne.s32.totalorder %s1044_s10, %s1040_s9 }
   0xa   : > { %p1136_p3 = scmp.eq.s32.totalorder %s636_s15, 0  ;;  %p98_p4 = scmp.eq.s32.totalorder %s636_s15, 1 }
   0xb   : > { %p1140_p5 = por %p46_p1, %p45_p0  ;;  %p104_p6 = scmp.eq.s32.totalorder %s637_s16, 1 }
   0xc   : > { %s1430_s18 = scalar_select %p1136_p3, 1, 0 }
   0xd   : > { %p1146_p7 = por %p1136_p3, %p51_p2  ;;  %p1150_p8 = por %p98_p4, %p45_p0 }
   0xe   : > { %p1154_p9 = por %p104_p6, %p51_p2  ;;  %p638_p10 = scmp.ge.s32.totalorder %s1060_s14, 1 }
   0xf   : > { %s1432_s20 = scalar_select %p1146_p7, 1, 0 }
  0x10   : > { %s1433_s21 = scalar_select %p1150_p8, 1, 0 }
  0x11   : > { %s1434_s22 = scalar_select %p1154_p9, 1, 0 }
  0x12   : > { %p111_p11 = scmp.lt.s32.totalorder %s1060_s14, 3  ;;  %s1066_s24 = smov [#allocation6]  }
  0x13   : > { %s124_s25 = sshll.u32 %s1066_s24, 4  ;;  %p723_p1 = scmp.lt.s32.totalorder %s1060_s14, 2  ;;  %s125_s25 = int_to_ptr.vmem [resolvable:$true] %s124_s25 }
  0x14   : > { %p1161_p13 = pnand %p638_p10, %p111_p11  ;;  %s31_s28 = sadd.s32 1, %s1056_s13 }
  0x15   : > { %p1170_p4 = pnand %p723_p1, %p1140_p5  ;;  %p1181_p6 = scmp.ge.s32.totalorder %s31_s28, 2 }
  0x16   : > { %s1435_s23 = scalar_select %p1161_p13, 1, 0 }
  0x17   : > { %p710_p0 = pneg %p1161_p13  ;;  %s135_s30 = sand.u32 1, %s1048_s11  }
  0x18   : > { %s1436_s26 = scalar_select %p1170_p4, 1, 0 }
  0x19   : > { %p1176_p2 = pnand %p710_p0, %p1136_p3  ;;  %s912_s5 = scalar_lea.hbm %s1422_s1, 256 }
  0x1a   : > { %s1438_s29 = scalar_select %p1181_p6, 1, 0 }
  0x1b   : > { %p913_p5 = scmp.ne.s32.totalorder %s1422_s1, %s912_s5  ;;  %p914_p10 = pneg %p1176_p2 }
  0x1c   : > { %p919_p0 = scmp.lt.u32.totalorder %s912_s5, %s1422_s1 }
  0x1d   : > { %p915_p11 = pnand %p914_p10, %p913_p5 }
  0x1f   : > { %p916_p1 = pneg %p915_p11 }
  0x21   : > { %p921_p12 = pnand %p919_p0, %p916_p1 }
  0x23   : > { %924 = shalt.err (!%p921_p12)
}
  0x24   : > { %s925_s16 = scalar_lea.vmem %s125_s25, 256  ;;  %p933_p7 = scmp.lt.s32.totalorder %s125_s25, %s125_s25 }
  0x25   : > { %p926_p9 = scmp.ne.s32.totalorder %s125_s25, %s925_s16  ;;  %p934_p13 = scmp.lt.s32.totalorder %s925_s16, %s925_s16 }
  0x27   : > { %p928_p8 = pnand %p926_p9, %p914_p10  ;;  %p935_p4 = por %p934_p13, %p933_p7 }
  0x29   : > { %p929_p3 = pneg %p928_p8 }
  0x2b   : > { %p936_p6 = pnand %p935_p4, %p929_p3 }
  0x2d   : > { %939 = shalt.err (!%p936_p6)
}
  0x2e   : > { %713 = dma.hbm_to_vmem [thread:$0]  (!%p1176_p2), %s1422_s1, 256, %s125_s25, [#allocation7]  }
  0x2f   : > { %p1439_p9 = scmp.ne.s32.totalorder %s1438_s29, 0  ;;  %s697_s3 = smul.u32 192, %s135_s30 }
  0x30   : > { %s698_s5 = smul.u32 3072, %s1056_s13  ;;  %s1221_s29 = scalar_lea.sflag [#allocation4], %s135_s30 }
  0x31   : > { %s1454_s28 = smov (%p1439_p9, %s31_s28), 0  ;;  %s139_s8 = scalar_lea.vmem [#allocation3], %s697_s3 }
  0x32   : > { %s35_s4 = ssub.s32 %s1056_s13, %s1454_s28  ;;  %s1212_s7 = scalar_lea.hbm %s1421_s0, %s698_s5 }
  0x33   : > { %p36_p3 = scmp.eq.s32.totalorder %s35_s4, 0  ;;  %s146_s15 = sshll.u32 %s139_s8, 4  ;;  %s1219_s15 = int_to_ptr.vmem [resolvable:$true] %s146_s15 }
  0x34   : > { %s940_s16 = scalar_lea.hbm %s1212_s7, 3072  ;;  %p1440_p8 = scmp.ne.s32.totalorder %s1436_s26, 0 }
  0x35   : > { %s1217_s25 = scalar_select %p36_p3, %s1048_s11, %s38_s17  }
  0x36   : > { %p941_p7 = scmp.ne.s32.totalorder %s1212_s7, %s940_s16  ;;  %p942_p12 = pneg %p1440_p8 }
  0x37   : > { %s945_s3 = scalar_lea.hbm %s1421_s0, 6144  ;;  %p946_p2 = scmp.lt.u32.totalorder %s1212_s7, %s1421_s0 }
  0x38   : > { %p943_p13 = pnand %p942_p12, %p941_p7  ;;  %p947_p6 = scmp.lt.u32.totalorder %s945_s3, %s940_s16 }
  0x39   : > { %p949_p10 = scmp.lt.u32.totalorder %s940_s16, %s1212_s7 }
  0x3a   : > { %p944_p4 = pneg %p943_p13  ;;  %p948_p5 = por %p947_p6, %p946_p2 }
  0x3c   : > { %p950_p11 = por %p949_p10, %p948_p5 }
  0x3e   : > { %p951_p1 = pnand %p950_p11, %p944_p4 }
  0x40   : > { %954 = shalt.err (!%p951_p1)
}
  0x41   : > { %s955_s17 = scalar_lea.vmem %s1219_s15, 3072  ;;  %s1067_s30 = smov [#allocation3]  }
  0x42   : > { %p956_p0 = scmp.ne.s32.totalorder %s1219_s15, %s955_s17  ;;  %s960_s27 = sshll.u32 %s1067_s30, 4  ;;  %s961_s27 = int_to_ptr.vmem [resolvable:$false] %s960_s27 }
  0x43   : > { %s962_s6 = scalar_lea.vmem %s961_s27, 6144  ;;  %p963_p7 = scmp.lt.s32.totalorder %s1219_s15, %s961_s27 }
  0x44   : > { %p958_p9 = pnand %p956_p0, %p942_p12  ;;  %p964_p13 = scmp.lt.s32.totalorder %s962_s6, %s955_s17 }
  0x46   : > { %p959_p3 = pneg %p958_p9  ;;  %p965_p2 = por %p964_p13, %p963_p7 }
  0x48   : > { %p966_p6 = pnand %p965_p2, %p959_p3 }
  0x4a   : > { %969 = shalt.err (!%p966_p6)
}
  0x4b   : > { %s1068_s8 = smov 256   ;;  %s1069_s16 = smov 16  }
  0x4c   : > { %717 = dma.hbm_to_vmem [thread:$0]  (!%p1440_p8), %s1212_s7, 3072, %s1219_s15, %s1221_s29, %s1068_s8, %s1068_s8, %s1069_s16  }
  0x4d   : > { %p1441_p12 = scmp.ne.s32.totalorder %s1435_s23, 0 }
  0x4e   : > { %s1252_s19 = sand.u32 (!%p1441_p12), 1, %s1044_s10   ;;  %p1442_p4 = scmp.ne.s32.totalorder (!%p1441_p12), %s1432_s20, 0 }
  0x4f   : > { %158 = sbr.rel (%p1441_p12) target bundleno = 504 (0x1f8), region = 28  ;;  %s161_s3 = scalar_lea.sflag (!%p1441_p12), [#allocation4], %s1252_s19 }
  0x50   : > { %s699_s24 = smul.u32 (!%p1441_p12), 192, %s1252_s19 }
  0x52   : > { %s1256_s4 = scalar_lea.vmem (!%p1441_p12), [#allocation3], %s699_s24 }
  0x56   : > { %1027 = dma.done.wait (%p1442_p4), %s161_s3, 3072  }
  0x57   : > { %1029 = vsyncadd (%p1442_p4), %s161_s3, 4294964224  ;;  %p1443_p8 = scmp.ne.s32.totalorder %s1430_s18, 0 }
  0x59   : > { %1031 = dma.done.wait (%p1443_p8), [#allocation7], 256  }
  0x5a   : > { %1033 = vsyncadd (%p1443_p8), [#allocation7], 4294967040  ;;  %s700_s23 = smul.u32 80, %s1252_s19  ;;  %v1267_v0 = vld [vmem:[#allocation6] sm:$0xff]  ;;  %v1269_v1 = vld [vmem:[#allocation6 + $0x8] sm:$0xff]  ;;  %s1273_s7 = smov 0  }
  0x5c   : > { %s1271_s26 = scalar_lea.vmem [#allocation8], %s700_s23 }
  0x5d LB: >> { %p200_p5 = scmp.lt.s32.totalorder %s1064_s7, 11  ;;  %v1070_v2 = vmov 0.0|0.0   ;;  %s1283_s29 = sadd.s32 1, %s1064_s7   ;;  %vm435_vm0 = vcmask 719872   ;;  %vm214_vm1 = vcmask 1039360   ;;  %vm230_vm2 = vcmask 949248   ;;  %s1064_s7 = sphi %s1273_s7, %s1444_s7  }
  0x5e   : >> { %658 = vmatprep.subr.bf16.mxu0 %v1070_v2  ;;  %p275_p10 = scmp.lt.s32.totalorder %s1283_s29, 11  ;;  %s1071_s17 = smov 127   ;;  %650 = vmatprep.mubr.msk.f32.mxu0 %vm435_vm0, %v1269_v1  ;;  %vm222_vm3 = vcmask 1031168   ;;  %vm238_vm4 = vcmask 941056   ;;  %vm246_vm5 = vcmask 932864   ;;  %vm254_vm6 = vcmask 850944  }
  0x5f   : >> { %s201_s18 = scalar_select %p200_p5, %s1064_s7, 11  ;;  %vm262_vm7 = vcmask 842752   ;;  %vm270_vm8 = vcmask 834560  }
  0x60   : >> { %s276_s5 = scalar_select %p275_p10, %s1283_s29, 11 }
  0x61   : >> { %s655_s20 = sshll.u32 %s201_s18, 4  ;;  %s1072_s30 = smov 116  }
  0x62   : >> { %s204_s15 = scalar_lea.vmem %s1256_s4, %s655_s20 [#allocation3]  ;;  %s656_s27 = sshll.u32 %s276_s5, 4 }
  0x63   : >> { %v1285_v3 = vld [vmem:[%s204_s15] sm:$0xff]  ;;  %v206_v4 = vld [vmem:[%s204_s15 + $0x8] sm:$0xff]  ;;  %s1073_s6 = smov 126   ;;  %s1074_s8 = smov 115  }
  0x64   : >> { %v797_v5 = vpack.i.bf16 %v206_v4, %v1285_v3  ;;  %s279_s16 = scalar_lea.vmem %s1256_s4, %s656_s27 [#allocation3]  ;;  %s1075_s24 = smov 114  }
  0x65   : >> { %s1076_s3 = smov 104   ;;  %s341_s23 = sadd.s32 2, %s1064_s7  ;;  %v1298_v6 = vld [vmem:[%s279_s16] sm:$0xff]  ;;  %v281_v7 = vld [vmem:[%s279_s16 + $0x8] sm:$0xff] }
  0x66   : >> { %798 = vrot.lane.b32.xlu0 %v797_v5, %s1071_s17  ;;  %808 = vrot.lane.b32.xlu1 %v797_v5, %s1072_s30  ;;  %p342_p11 = scmp.lt.s32.totalorder %s341_s23, 11  ;;  %s1077_s18 = smov 103   ;;  %v842_v8 = vpack.i.bf16 %v281_v7, %v1298_v6 }
  0x67   : >> { %s1078_s20 = smov 102   ;;  %p195_p1 = scmp.ge.s32.totalorder %s1283_s29, 10  }
  0x68   : >> { %s1456_s23 = smov (!%p342_p11, %s341_s23), 11  ;;  %s701_s27 = smul.u32 (%p195_p1), 1280, %s1052_s12 }
  0x69   : >> { %s657_s15 = sshll.u32 %s1456_s23, 4  ;;  %p1445_p9 = scmp.ne.s32.totalorder (%p195_p1), %s1433_s21, 0 }
  0x6a   : >> { %803 = vrot.lane.b32.xlu0 %v797_v5, %s1073_s6  ;;  %813 = vrot.lane.b32.xlu1 %v797_v5, %s1074_s8  ;;  %s346_s5 = scalar_lea.vmem %s1256_s4, %s657_s15 [#allocation3]  ;;  %s1080_s4 = smov (%p195_p1), [#allocation8]  }
  0x6b   : >> { %v1308_v9 = vld [vmem:[%s346_s5] sm:$0xff]  ;;  %v348_v10 = vld [vmem:[%s346_s5 + $0x8] sm:$0xff] }
  0x6c   : >> { %v877_v11 = vpack.i.bf16 %v348_v10, %v1308_v9 }
  0x6e   : >> { %818 = vrot.lane.b32.xlu0 %v797_v5, %s1075_s24  ;;  %823 = vrot.lane.b32.xlu1 %v797_v5, %s1076_s3 }
  0x72   : >> { %828 = vrot.lane.b32.xlu0 %v797_v5, %s1077_s18  ;;  %833 = vrot.lane.b32.xlu1 %v797_v5, %s1078_s20 }
  0x76   : >> { %843 = vrot.lane.b32.xlu1 %v842_v8, %s1073_s6  ;;  %838 = vrot.lane.b32.xlu0 %v842_v8, %s1071_s17 }
  0x7a   : >> { %853 = vrot.lane.b32.xlu1 %v842_v8, %s1074_s8  ;;  %848 = vrot.lane.b32.xlu0 %v842_v8, %s1072_s30 }
  0x7e   : >> { %863 = vrot.lane.b32.xlu1 %v842_v8, %s1076_s3  ;;  %858 = vrot.lane.b32.xlu0 %v842_v8, %s1075_s24 }
  0x82   : >> { %873 = vrot.lane.b32.xlu1 %v842_v8, %s1078_s20  ;;  %868 = vrot.lane.b32.xlu0 %v842_v8, %s1077_s18 }
  0x86   : >> { %878 = vrot.lane.b32.xlu0 %v877_v11, %s1071_s17  ;;  %883 = vrot.lane.b32.xlu1 %v877_v11, %s1073_s6  ;;  %s651_s17 = sshll.u32 %s1064_s7, 3  ;;  %s1444_s7 = smov %s1283_s29 }
  0x87   : > { %s529_s6 = sshll.u32 (%p195_p1), %s1271_s26, 4  ;;  %s1370_s7 = scalar_lea.hbm (%p195_p1), %s1423_s2, %s701_s27  ;;  %s1372_s6 = int_to_ptr.vmem [resolvable:$true] %s529_s6 }
  0x88   : > { %s974_s29 = sshll.u32 (%p195_p1), %s1080_s4, 4  ;;  %s975_s29 = int_to_ptr.vmem [resolvable:$false] %s974_s29 }
  0x89   : > { %s976_s12 = scalar_lea.vmem (%p195_p1), %s975_s29, 2560  ;;  %p977_p13 = scmp.lt.s32.totalorder (%p195_p1), %s1372_s6, %s975_s29 }
  0x8a   : >> { %888 = vrot.lane.b32.xlu0 %v877_v11, %s1072_s30  ;;  %893 = vrot.lane.b32.xlu1 %v877_v11, %s1074_s8  ;;  %s511_s30 = scalar_lea.vmem %s1271_s26, %s651_s17 [#allocation8] }
  0x8e   : >> { %898 = vrot.lane.b32.xlu0 %v877_v11, %s1075_s24  ;;  %903 = vrot.lane.b32.xlu1 %v877_v11, %s1076_s3  ;;  %s514_s24 = scalar_lea.sflag (%p195_p1), [#allocation5], %s1252_s19  ;;  %s970_s3 = scalar_lea.vmem (%p195_p1), %s1372_s6, 1280 }
  0x8f   : > { %p971_p0 = scmp.ne.s32.totalorder (%p195_p1), %s1372_s6, %s970_s3  ;;  %p978_p2 = scmp.lt.s32.totalorder (%p195_p1), %s976_s12, %s970_s3 }
  0x91   : > { %p972_p3 = pnand (%p195_p1), %p971_p0, %p1445_p9  ;;  %p979_p6 = por (%p195_p1), %p978_p2, %p977_p13 }
  0x92   : >> { %908 = vrot.lane.b32.xlu0 %v877_v11, %s1077_s18  ;;  %401 = vrot.lane.b32.xlu1 %v1308_v9, %s1078_s20 }
  0x93   : > { %p973_p7 = pneg (%p195_p1), %p972_p3 }
  0x95   : > { %p980_p12 = pnand (%p195_p1), %p979_p6, %p973_p7 }
  0x96   : >> { %403 = vrot.lane.b32.xlu0 %v348_v10, %s1078_s20 }
  0xd8   : >> { %v799_v12 = vpop.permute.xlu0 %798  ;;  %v809_v13 = vpop.permute.xlu1 %808 }
  0xd9   : >> { %v801_v14 = vunpack.i.h.bf16 %v799_v12  ;;  %v800_v15 = vunpack.i.l.bf16 %v799_v12  ;;  %v811_v16 = vunpack.i.h.bf16 %v809_v13  ;;  %v810_v17 = vunpack.i.l.bf16 %v809_v13 }
  0xdb   : >> { %v215_v18 = vsel %vm214_vm1, %v800_v15, %v801_v14  ;;  %v231_v22 = vsel %vm230_vm2, %v810_v17, %v811_v16 }
  0xdc   : >> { %v804_v19 = vpop.permute.xlu0 %803  ;;  %v659_v20 = vpack.c.bf16 %v215_v18, %v1285_v3  ;;  %v814_v21 = vpop.permute.xlu1 %813 }
  0xdd   : >> { %v806_v23 = vunpack.i.h.bf16 %v804_v19  ;;  %v805_v24 = vunpack.i.l.bf16 %v804_v19  ;;  %v816_v25 = vunpack.i.h.bf16 %v814_v21  ;;  %v815_v26 = vunpack.i.l.bf16 %v814_v21 }
  0xde   : >> { %660 = vmatpush1.bf16.msra.mxu0 %v659_v20 }
  0xdf   : >> { %661 = vmatprep.subr.bf16.mxu0 %v1070_v2  ;;  %v223_v27 = vsel %vm222_vm3, %v805_v24, %v806_v23  ;;  %v239_v31 = vsel %vm238_vm4, %v815_v26, %v816_v25 }
  0xe0   : >> { %v819_v28 = vpop.permute.xlu0 %818  ;;  %v662_v29 = vpack.c.bf16 %v231_v22, %v223_v27  ;;  %v824_v30 = vpop.permute.xlu1 %823 }
  0xe1   : >> { %v821_v32 = vunpack.i.h.bf16 %v819_v28  ;;  %v820_v33 = vunpack.i.l.bf16 %v819_v28  ;;  %v826_v34 = vunpack.i.h.bf16 %v824_v30  ;;  %v825_v35 = vunpack.i.l.bf16 %v824_v30 }
  0xe2   : >> { %663 = vmatpush1.bf16.msra.mxu0 %v662_v29 }
  0xe3   : >> { %664 = vmatprep.subr.bf16.mxu0 %v1070_v2  ;;  %v247_v36 = vsel %vm246_vm5, %v820_v33, %v821_v32  ;;  %v255_v40 = vsel %vm254_vm6, %v825_v35, %v826_v34 }
  0xe4   : >> { %v829_v37 = vpop.permute.xlu0 %828  ;;  %v665_v38 = vpack.c.bf16 %v247_v36, %v239_v31  ;;  %v834_v39 = vpop.permute.xlu1 %833 }
  0xe5   : >> { %v831_v41 = vunpack.i.h.bf16 %v829_v37  ;;  %v830_v42 = vunpack.i.l.bf16 %v829_v37  ;;  %v836_v43 = vunpack.i.h.bf16 %v834_v39  ;;  %v835_v44 = vunpack.i.l.bf16 %v834_v39 }
  0xe6   : >> { %666 = vmatpush1.bf16.msra.mxu0 %v665_v38 }
  0xe7   : >> { %667 = vmatprep.subr.bf16.mxu0 %v1070_v2  ;;  %v263_v45 = vsel %vm262_vm7, %v830_v42, %v831_v41  ;;  %v271_v46 = vsel %vm270_vm8, %v835_v44, %v836_v43 }
  0xe8   : >> { %v668_v47 = vpack.c.bf16 %v263_v45, %v255_v40  ;;  %v844_v48 = vpop.permute.xlu1 %843  ;;  %v839_v49 = vpop.permute.xlu0 %838  ;;  %v671_v54 = vpack.c.bf16 %v1298_v6, %v271_v46 }
  0xe9   : >> { %v846_v50 = vunpack.i.h.bf16 %v844_v48  ;;  %v845_v51 = vunpack.i.l.bf16 %v844_v48  ;;  %v841_v52 = vunpack.i.h.bf16 %v839_v49  ;;  %v840_v53 = vunpack.i.l.bf16 %v839_v49 }
  0xea   : >> { %669 = vmatpush1.bf16.msra.mxu0 %v668_v47 }
  0xeb   : >> { %670 = vmatprep.subr.bf16.mxu0 %v1070_v2  ;;  %v289_v55 = vsel %vm214_vm1, %v840_v53, %v841_v52  ;;  %v296_v56 = vsel %vm222_vm3, %v845_v51, %v846_v50 }
  0xec   : >> { %v854_v57 = vpop.permute.xlu1 %853  ;;  %v849_v58 = vpop.permute.xlu0 %848  ;;  %v674_v63 = vpack.c.bf16 %v296_v56, %v289_v55 }
  0xed   : >> { %v856_v59 = vunpack.i.h.bf16 %v854_v57  ;;  %v855_v60 = vunpack.i.l.bf16 %v854_v57  ;;  %v851_v61 = vunpack.i.h.bf16 %v849_v58  ;;  %v850_v62 = vunpack.i.l.bf16 %v849_v58 }
  0xee   : >> { %672 = vmatpush1.bf16.msra.mxu0 %v671_v54  ;;  %v1079_v58 = vmov 0.0  }
  0xef   : >> { %673 = vmatprep.subr.bf16.mxu0 %v1070_v2  ;;  %v303_v3 = vsel %vm230_vm2, %v850_v62, %v851_v61  ;;  %v310_v4 = vsel %vm238_vm4, %v855_v60, %v856_v59 }
  0xf0   : >> { %v864_v5 = vpop.permute.xlu1 %863  ;;  %v859_v6 = vpop.permute.xlu0 %858  ;;  %v677_v12 = vpack.c.bf16 %v310_v4, %v303_v3 }
  0xf1   : >> { %v866_v7 = vunpack.i.h.bf16 %v864_v5  ;;  %v865_v8 = vunpack.i.l.bf16 %v864_v5  ;;  %v861_v10 = vunpack.i.h.bf16 %v859_v6  ;;  %v860_v11 = vunpack.i.l.bf16 %v859_v6 }
  0xf2   : >> { %675 = vmatpush1.bf16.msra.mxu0 %v674_v63 }
  0xf3   : >> { %676 = vmatprep.subr.bf16.mxu0 %v1070_v2  ;;  %v317_v13 = vsel %vm246_vm5, %v860_v11, %v861_v10  ;;  %v324_v14 = vsel %vm254_vm6, %v865_v8, %v866_v7 }
  0xf4   : >> { %v874_v15 = vpop.permute.xlu1 %873  ;;  %v869_v16 = vpop.permute.xlu0 %868  ;;  %v680_v21 = vpack.c.bf16 %v324_v14, %v317_v13 }
  0xf5   : >> { %v876_v17 = vunpack.i.h.bf16 %v874_v15  ;;  %v875_v18 = vunpack.i.l.bf16 %v874_v15  ;;  %v871_v19 = vunpack.i.h.bf16 %v869_v16  ;;  %v870_v20 = vunpack.i.l.bf16 %v869_v16 }
  0xf6   : >> { %678 = vmatpush1.bf16.msra.mxu0 %v677_v12 }
  0xf7   : >> { %679 = vmatprep.subr.bf16.mxu0 %v1070_v2  ;;  %v331_v22 = vsel %vm262_vm7, %v870_v20, %v871_v19  ;;  %v338_v23 = vsel %vm270_vm8, %v875_v18, %v876_v17 }
  0xf8   : >> { %v879_v24 = vpop.permute.xlu0 %878  ;;  %v884_v25 = vpop.permute.xlu1 %883  ;;  %v683_v28 = vpack.c.bf16 %v338_v23, %v331_v22 }
  0xf9   : >> { %v881_v26 = vunpack.i.h.bf16 %v879_v24  ;;  %v880_v27 = vunpack.i.l.bf16 %v879_v24  ;;  %v886_v29 = vunpack.i.h.bf16 %v884_v25  ;;  %v885_v30 = vunpack.i.l.bf16 %v884_v25 }
  0xfa   : >> { %681 = vmatpush1.bf16.msra.mxu0 %v680_v21 }
  0xfb   : >> { %682 = vmatprep.subr.bf16.mxu0 %v1070_v2  ;;  %v356_v31 = vsel %vm214_vm1, %v880_v27, %v881_v26  ;;  %v363_v39 = vsel %vm222_vm3, %v885_v30, %v886_v29 }
  0xfc   : >> { %v889_v32 = vpop.permute.xlu0 %888  ;;  %v894_v33 = vpop.permute.xlu1 %893  ;;  %v686_v36 = vpack.c.bf16 %v356_v31, %v1308_v9 }
  0xfd   : >> { %v891_v34 = vunpack.i.h.bf16 %v889_v32  ;;  %v890_v35 = vunpack.i.l.bf16 %v889_v32  ;;  %v896_v37 = vunpack.i.h.bf16 %v894_v33  ;;  %v895_v38 = vunpack.i.l.bf16 %v894_v33 }
  0xfe   : >> { %684 = vmatpush1.bf16.msra.mxu0 %v683_v28 }
  0xff   : >> { %685 = vmatprep.subr.bf16.mxu0 %v1070_v2  ;;  %v370_v40 = vsel %vm230_vm2, %v890_v35, %v891_v34  ;;  %v377_v9 = vsel %vm238_vm4, %v895_v38, %v896_v37 }
 0x100   : >> { %v899_v41 = vpop.permute.xlu0 %898  ;;  %v904_v42 = vpop.permute.xlu1 %903  ;;  %v689_v45 = vpack.c.bf16 %v370_v40, %v363_v39 }
 0x101   : >> { %v901_v43 = vunpack.i.h.bf16 %v899_v41  ;;  %v900_v44 = vunpack.i.l.bf16 %v899_v41  ;;  %v906_v46 = vunpack.i.h.bf16 %v904_v42  ;;  %v905_v47 = vunpack.i.l.bf16 %v904_v42 }
 0x102   : >> { %687 = vmatpush1.bf16.msra.mxu0 %v686_v36 }
 0x103   : >> { %688 = vmatprep.subr.bf16.mxu0 %v1070_v2  ;;  %v384_v48 = vsel %vm246_vm5, %v900_v44, %v901_v43  ;;  %v391_v53 = vsel %vm254_vm6, %v905_v47, %v906_v46 }
 0x104   : >> { %v909_v49 = vpop.permute.xlu0 %908  ;;  %v692_v52 = vpack.c.bf16 %v384_v48, %v377_v9  ;;  %v402_v56 = vpop.permute.xlu1 %401 }
 0x105   : >> { %v911_v50 = vunpack.i.h.bf16 %v909_v49  ;;  %v910_v51 = vunpack.i.l.bf16 %v909_v49 }
 0x106   : >> { %690 = vmatpush1.bf16.msra.mxu0 %v689_v45 }
 0x107   : >> { %691 = vmatprep.subr.bf16.mxu0 %v1070_v2  ;;  %v398_v54 = vsel %vm262_vm7, %v910_v51, %v911_v50 }
 0x108   : >> { %v695_v55 = vpack.c.bf16 %v398_v54, %v391_v53  ;;  %v404_v57 = vpop.permute.xlu0 %403 }
 0x109   : >> { %v405_v59 = vsel %vm270_vm8, %v402_v56, %v404_v57 }
 0x10a   : >> { %693 = vmatpush1.bf16.msra.mxu0 %v692_v52 }
 0x10b   : >> { %694 = vmatprep.subr.bf16.mxu0 %v1070_v2 }
 0x10e   : >> { %696 = vmatpush1.bf16.msra.mxu0 %v695_v55 }
 0x10f   : >> { %491 = vmatprep.subr.mxu0 %v1079_v58 }
 0x112   : >> { %492 = vmatpush1.msra.mxu0 %v405_v59 }
 0x113   : >> { %504 = vmatmul.mubr.f32.vlgmr.msra.gmra.mrb[0].mxu0 %v1267_v0 }
 0x1e3   : > { %197 = sbr.rel (!%p195_p1) target bundleno = 93 (0x5d), region = 88 }
 0x1e6   : >> { %v505_v60 = vpop.f32.mrb[0].mxu0 }
 0x1e7   : >> { %v509_v61 = vmax.f32 %v505_v60, 0.0  ;;  %v507_v62 = vpop.f32.mrb[1].mxu0 }
 0x1e9   : >> { %512 = vst [vmem:[%s511_s30] sm:$0xff] %v509_v61 }
 0x1ea   : > { %983 = shalt.err (!%p980_p12)
}
 0x1eb   : > { %s984_s26 = scalar_lea.hbm %s1370_s7, 1280  ;;  %s988_s20 = scalar_lea.hbm %s1423_s2, 2560 }
 0x1ec   : > { %p985_p4 = scmp.ne.s32.totalorder %s1370_s7, %s984_s26  ;;  %p989_p10 = scmp.lt.u32.totalorder %s1370_s7, %s1423_s2 }
 0x1ed   : > { %p990_p11 = scmp.lt.u32.totalorder %s988_s20, %s984_s26  ;;  %p992_p0 = scmp.lt.u32.totalorder %s984_s26, %s1370_s7 }
 0x1ee   : > { %p986_p8 = pnand %p985_p4, %p1445_p9 }
 0x1ef   : > { %p991_p1 = por %p990_p11, %p989_p10 }
 0x1f0   : > { %p987_p5 = pneg %p986_p8 }
 0x1f1   : > { %p993_p3 = por %p992_p0, %p991_p1 }
 0x1f3   : > { %p994_p7 = pnand %p993_p3, %p987_p5 }
 0x1f5   : > { %997 = shalt.err (!%p994_p7)
}
 0x1f6   : > { %s1081_s17 = smov 128   ;;  %s1082_s30 = smov 8  }
 0x1f7   : > { %708 = dma.vmem_to_hbm [thread:$0]  (%p1445_p9), %s1372_s6, 1280, %s1370_s7, %s514_s24, %s1081_s17, %s1081_s17, %s1082_s30  }
 0x1f8 PF: > { %s544_s27 = sand.u32 1, %s1040_s9   ;;  %p1446_p13 = scmp.ne.s32.totalorder %s1434_s22, 0 }
 0x1f9   : > { %p1447_p2 = scmp.ge.s32.totalorder %s1060_s14, 2  ;;  %s545_s8 = scalar_lea.sflag [#allocation5], %s544_s27 }
 0x1fb   : > { %p719_p6 = pnand %p1447_p2, %p1446_p13 }
 0x1fd   : > { %1035 = dma.done.wait (!%p719_p6), %s545_s8, 1280  }
 0x1fe   : > { %1037 = vsyncadd (!%p719_p6), %s545_s8, 4294966016  ;;  %s19_s14 = sadd.s32 1, %s1060_s14   ;;  %s1448_s9 = smov %s1044_s10 }
 0x1ff   : > { %p16_p12 = scmp.ge.s32.totalorder %s19_s14, 4   ;;  %s1449_s10 = smov %s1048_s11 }
 0x200   : > { %s1450_s11 = smov %s1217_s25  ;;  %s1451_s12 = smov %s1056_s13 }
 0x201   : > { %s1452_s13 = smov %s1454_s28  ;;  %18 = sbr.rel (!%p16_p12) target bundleno = 7 (0x7), region = 99 }
 0x208   :  { %550 = vsyncpa [#allocation4], 1 }
 0x209   :  { %552 = vsyncpa [#allocation4 + $0x1], 1 }
 0x20a   :  { %553 = vsyncpa [#allocation7], 1 }
 0x20b   :  { %554 = vsyncpa [#allocation5], 1 }
 0x20c   :  { %556 = vsyncpa [#allocation5 + $0x1], 1 }

</bundles_post_ra>
